<compile_context>
chip_gen: v5e
topology: v5e:2x2
jax: 0.10.0
libtpu: 0.0.40
codegen_flags: <defaults>
</compile_context>

<pallas_src>
import math
import functools

import jax
import jax.numpy as jnp
import numpy as np
from jax.experimental import pallas as pl
from jax.experimental.pallas import tpu as pltpu

_MIB = 1024 * 1024


def _round_up(x, m):
    return ((x + m - 1) // m) * m


def _mha_kernel(x_ref, wqkv_ref, wo_ref, o_ref, ctx_ref, *, num_heads, d_kp):
    # x_ref:    (Bb, S, E)    bf16
    # wqkv_ref: (E, 3*Ep)     bf16, [Wq^T*scale | Wk^T | Wv^T], per-head cols padded to d_kp
    # wo_ref:   (Ep, E)       bf16, Wo^T with per-head rows padded to d_kp
    # o_ref:    (Bb, S, E)    output dtype
    # ctx_ref:  (Bb*S, Ep)    bf16 VMEM scratch ("concat" buffer)
    Bb, S, E = x_ref.shape
    Ep = num_heads * d_kp
    rows = Bb * S

    x2d = x_ref[...].reshape(rows, E)

    # Fused QKV projection: one big MXU matmul, f32 accumulate, bf16 carry.
    qkv = jnp.dot(x2d, wqkv_ref[...], preferred_element_type=jnp.float32)
    qkv = qkv.astype(jnp.bfloat16).reshape(Bb, S, 3 * Ep)

    for h in range(num_heads):                       # static unroll; all slices 128-lane aligned
        lo = h * d_kp
        qh = qkv[:, :, lo:lo + d_kp]                 # pre-scaled by 1/sqrt(d_k)
        kh = qkv[:, :, Ep + lo:Ep + lo + d_kp]
        vh = qkv[:, :, 2 * Ep + lo:2 * Ep + lo + d_kp]

        # Scores on the MXU, contraction over d_kp (zero-padded lanes contribute 0).
        s = jnp.einsum("bqd,bkd->bqk", qh, kh,
                       preferred_element_type=jnp.float32)       # (Bb, S, S) f32

        # Numerically-stable softmax; normalization via EUP reciprocal.
        m = jnp.max(s, axis=-1, keepdims=True)
        e = jnp.exp(s - m)
        denom = jnp.sum(e, axis=-1, keepdims=True)
        p = (e * pl.reciprocal(denom, approx=True)).astype(jnp.bfloat16)

        ctx = jnp.einsum("bqk,bkd->bqd", p, vh,
                         preferred_element_type=jnp.float32)     # (Bb, S, d_kp)

        # Lane-aligned "concat": write this head's context into its column slab.
        ctx_ref[:, lo:lo + d_kp] = ctx.reshape(rows, d_kp).astype(jnp.bfloat16)

    # Single output projection: contraction over the full padded embed dim (K = Ep >= 128).
    out = jnp.dot(ctx_ref[...], wo_ref[...], preferred_element_type=jnp.float32)
    o_ref[...] = out.reshape(Bb, S, E).astype(o_ref.dtype)


def prepare_mha_weights(wq, wk, wv, wo, *, num_heads, dtype=jnp.bfloat16):
    """One-time weight preprocessing (hoist out of the per-forward path).

    wq/wk/wv/wo are PyTorch nn.Linear weights, shape (out_features, in_features).
    Returns (w_qkv, wo_pad, d_kp) with per-head column/row slabs padded to 128 lanes.
    """
    E = wq.shape[0]
    assert E % num_heads == 0
    d_k = E // num_heads
    d_kp = d_k if d_k % 128 == 0 else _round_up(d_k, 128)
    Ep = num_heads * d_kp
    scale = 1.0 / math.sqrt(d_k)

    def pad_head_cols(wt):  # wt: (E_in, E_out) pre-transposed projection
        wt = wt.reshape(E, num_heads, d_k)
        wt = jnp.pad(wt, ((0, 0), (0, 0), (0, d_kp - d_k)))
        return wt.reshape(E, Ep)

    # nn.Linear(x) = x @ W.T; fold 1/sqrt(d_k) into the Q columns.
    w_qkv = jnp.concatenate(
        [pad_head_cols(wq.T * scale), pad_head_cols(wk.T), pad_head_cols(wv.T)],
        axis=1,
    ).astype(dtype)

    wo_t = wo.T.reshape(num_heads, d_k, E)
    wo_pad = jnp.pad(wo_t, ((0, 0), (0, d_kp - d_k), (0, 0))).reshape(Ep, E).astype(dtype)
    return w_qkv, wo_pad, d_kp


def _estimate_vmem_bytes(Bb, S, E, Ep):
    """Rough per-grid-step VMEM footprint (bytes), used for block sizing & vmem_limit."""
    rows = Bb * S
    x_blk = rows * E * 2 * 2            # bf16 input block, double-buffered
    o_blk = rows * E * 4 * 2            # (<=) f32 output block, double-buffered
    w_qkv = E * 3 * Ep * 2 * 2          # resident fused weight (assume 2 buffers)
    w_o = Ep * E * 2 * 2
    ctx = rows * Ep * 2                 # bf16 concat scratch
    qkv_val = rows * 3 * Ep * (4 + 2)   # f32 matmul result + bf16 copy, transiently live
    scores = Bb * S * S * 4 * 3         # s / exp / p per head
    return x_blk + o_blk + w_qkv + w_o + ctx + qkv_val + scores


def _pick_batch_block(B, S, E, Ep, vmem_budget_bytes, target_rows):
    """Largest divisor of B that fits the VMEM budget and ~target_rows rows/step,
    preferring >= 2 grid steps so both v7x TensorCores (and megacore) get work."""
    divs = [d for d in range(1, B + 1) if B % d == 0]
    feas = [d for d in divs
            if d * S <= max(target_rows, S)
            and _estimate_vmem_bytes(d, S, E, Ep) <= vmem_budget_bytes]
    if not feas:
        feas = [1]
    multi = [d for d in feas if B // d >= 2]
    return max(multi) if multi else max(feas)


def multi_head_attention_classical(x, w_qkv, wo_pad, *, num_heads, d_kp,
                                   out_dtype=None, batch_block=None,
                                   vmem_budget_bytes=48 * _MIB,
                                   target_rows=256):
    """x: (B, S, E); w_qkv/wo_pad from prepare_mha_weights()."""
    B, S, E = x.shape
    assert E % num_heads == 0
    Ep = num_heads * d_kp
    assert w_qkv.shape == (E, 3 * Ep)
    assert wo_pad.shape == (Ep, E)
    out_dtype = x.dtype if out_dtype is None else out_dtype

    Bb = (_pick_batch_block(B, S, E, Ep, vmem_budget_bytes, target_rows)
          if batch_block is None else batch_block)
    assert B % Bb == 0
    grid = (B // Bb,)
    rows = Bb * S

    est = _estimate_vmem_bytes(Bb, S, E, Ep)
    vmem_limit = int(min(vmem_budget_bytes, max(32 * _MIB, (est * 3) // 2)))

    out_bytes = jnp.dtype(out_dtype).itemsize
    cost = pl.CostEstimate(
        flops=(2 * B * S * E * 3 * Ep            # fused QKV projection
               + 4 * num_heads * B * S * S * d_kp  # scores + context per head
               + 2 * B * S * Ep * E),            # output projection
        transcendentals=num_heads * B * S * S,   # exp per score element
        bytes_accessed=(B * S * E * 2 + B * S * E * out_bytes
                        + E * 3 * Ep * 2 + Ep * E * 2),
    )

    kernel = functools.partial(_mha_kernel, num_heads=num_heads, d_kp=d_kp)

    return pl.pallas_call(
        kernel,
        out_shape=jax.ShapeDtypeStruct((B, S, E), out_dtype),
        grid_spec=pltpu.PrefetchScalarGridSpec(
            num_scalar_prefetch=0,
            grid=grid,
            in_specs=[
                pl.BlockSpec((Bb, S, E), lambda b: (b, 0, 0)),       # x: Bb batch elems/step
                pl.BlockSpec((E, 3 * Ep), lambda b: (0, 0)),         # fused QKV weight (resident)
                pl.BlockSpec((Ep, E), lambda b: (0, 0)),             # padded Wo^T (resident)
            ],
            out_specs=pl.BlockSpec((Bb, S, E), lambda b: (b, 0, 0)),
            scratch_shapes=[pltpu.VMEM((rows, Ep), jnp.bfloat16)],   # head-concat buffer
        ),
        compiler_params=pltpu.CompilerParams(
            dimension_semantics=("parallel",),
            vmem_limit_bytes=vmem_limit,
        ),
        cost_estimate=cost,
    )(x.astype(jnp.bfloat16), w_qkv, wo_pad)


def _reference(x, wq, wk, wv, wo, num_heads):
    """Pure-JAX f32 reference reproducing the PyTorch forward (eval mode, mask=None)."""
    B, S, E = x.shape
    d_k = E // num_heads
    q = x @ wq.T
    k = x @ wk.T
    v = x @ wv.T

    def split(t):  # (B, S, E) -> (B, H, S, d_k)
        return t.reshape(B, S, num_heads, d_k).transpose(0, 2, 1, 3)

    Q, K, V = split(q), split(k), split(v)
    scores = jnp.einsum("bhqd,bhkd->bhqk", Q, K) / math.sqrt(d_k)
    p = jax.nn.softmax(scores, axis=-1)
    attn = jnp.einsum("bhqk,bhkd->bhqd", p, V)
    concat = attn.transpose(0, 2, 1, 3).reshape(B, S, E)
    return concat @ wo.T


if __name__ == "__main__":
    # Small shapes consistent with the module's forward: (batch, seq, embed)
    B, S, E, H = 2, 8, 32, 4

    key = jax.random.PRNGKey(0)
    kx, kq, kk, kv, ko = jax.random.split(key, 5)

    x = jax.random.normal(kx, (B, S, E), dtype=jnp.float32)

    # PyTorch-style uniform(-1/sqrt(E), 1/sqrt(E)) init for the Linear weights.
    bound = 1.0 / math.sqrt(E)
    wq = jax.random.uniform(kq, (E, E), jnp.float32, -bound, bound)
    wk = jax.random.uniform(kk, (E, E), jnp.float32, -bound, bound)
    wv = jax.random.uniform(kv, (E, E), jnp.float32, -bound, bound)
    wo = jax.random.uniform(ko, (E, E), jnp.float32, -bound, bound)

    # Weight preprocessing is done ONCE (model-init time), not per forward call.
    w_qkv, wo_pad, d_kp = prepare_mha_weights(wq, wk, wv, wo, num_heads=H)
    w_qkv = jax.block_until_ready(w_qkv)
    wo_pad = jax.block_until_ready(wo_pad)

    out = multi_head_attention_classical(x, w_qkv, wo_pad, num_heads=H, d_kp=d_kp)
    out = jax.block_until_ready(out)

    ref = _reference(x, wq, wk, wv, wo, H)
    # bf16 matmul inputs + approx reciprocal -> loosened tolerance vs the f32 reference.
    np.testing.assert_allclose(np.asarray(out), np.asarray(ref), rtol=3e-2, atol=3e-2)

    print("KERNEL_OK")
</pallas_src>

<mosaic_0001>
module attributes {stable_mosaic.version = 11 : i64} {
  func.func @_mha_kernel(%arg0: i32, %arg1: memref<1x8x32xbf16, #tpu.memory_space<vmem>>, %arg2: memref<32x1536xbf16, #tpu.memory_space<vmem>>, %arg3: memref<512x32xbf16, #tpu.memory_space<vmem>>, %arg4: memref<1x8x32xf32, #tpu.memory_space<vmem>>, %arg5: memref<8x512xbf16, #tpu.memory_space<vmem>>) attributes {dimension_semantics = [#tpu.dimension_semantics<parallel>], iteration_bounds = array<i64: 2>, scalar_prefetch = 0 : i64, scratch_operands = 1 : i64, tpu.core_type = #tpu.core_type<tc>, window_params = [{transform_indices = @transform_0, window_bounds = array<i64: 1, 8, 32>}, {pipeline_mode = #tpu.pipeline_mode<synchronous>, transform_indices = @transform_1, window_bounds = array<i64: 32, 1536>}, {pipeline_mode = #tpu.pipeline_mode<synchronous>, transform_indices = @transform_2, window_bounds = array<i64: 512, 32>}, {transform_indices = @transform_3, window_bounds = array<i64: 1, 8, 32>}]} {
    %c0 = arith.constant 0 : index
    %c0_0 = arith.constant 0 : index
    %c0_1 = arith.constant 0 : index
    %0 = vector.load %arg1[%c0, %c0_0, %c0_1] : memref<1x8x32xbf16, #tpu.memory_space<vmem>>, vector<1x8x32xbf16>
    %1 = vector.shape_cast %0 : vector<1x8x32xbf16> to vector<8x32xbf16>
    %c0_2 = arith.constant 0 : index
    %c0_3 = arith.constant 0 : index
    %2 = vector.load %arg2[%c0_2, %c0_3] : memref<32x1536xbf16, #tpu.memory_space<vmem>>, vector<32x1536xbf16>
    %cst = arith.constant dense<0.000000e+00> : vector<8x1536xf32>
    %3 = tpu.matmul %1, %2, %cst {dimension_numbers = #tpu.dot_dimension_numbers<[1], [0], [0], [1], [0, 0, 1, 1], [], []>} : vector<8x32xbf16>, vector<32x1536xbf16>, vector<8x1536xf32> -> vector<8x1536xf32>
    %4 = arith.truncf %3 : vector<8x1536xf32> to vector<8x1536xbf16>
    %5 = vector.shape_cast %4 : vector<8x1536xbf16> to vector<1x8x1536xbf16>
    %6 = vector.extract_strided_slice %5 {offsets = [0, 0, 0], sizes = [1, 8, 128], strides = [1, 1, 1]} : vector<1x8x1536xbf16> to vector<1x8x128xbf16>
    %7 = vector.extract_strided_slice %5 {offsets = [0, 0, 512], sizes = [1, 8, 128], strides = [1, 1, 1]} : vector<1x8x1536xbf16> to vector<1x8x128xbf16>
    %8 = vector.extract_strided_slice %5 {offsets = [0, 0, 1024], sizes = [1, 8, 128], strides = [1, 1, 1]} : vector<1x8x1536xbf16> to vector<1x8x128xbf16>
    "tpu.trace_start"() <{level = 10 : i32, message = "bqd,bkd->bqk"}> : () -> ()
    %cst_4 = arith.constant dense<0.000000e+00> : vector<1x8x8xf32>
    %9 = tpu.matmul %6, %7, %cst_4 {dimension_numbers = #tpu.dot_dimension_numbers<[2], [2], [1], [1], [0, 0, 0, 1, 1, 1], [0], [0]>} : vector<1x8x128xbf16>, vector<1x8x128xbf16>, vector<1x8x8xf32> -> vector<1x8x8xf32>
    "tpu.trace_stop"() : () -> ()
    %cst_5 = arith.constant dense<0xFF800000> : vector<1x8xf32>
    %10 = vector.multi_reduction <maximumf>, %9, %cst_5 [2] : vector<1x8x8xf32> to vector<1x8xf32>
    %11 = vector.shape_cast %10 : vector<1x8xf32> to vector<1x8x1xf32>
    %12 = vector.broadcast %11 : vector<1x8x1xf32> to vector<1x8x8xf32>
    %13 = arith.subf %9, %12 : vector<1x8x8xf32>
    %14 = math.exp %13 : vector<1x8x8xf32>
    %cst_6 = arith.constant dense<0.000000e+00> : vector<1x8xf32>
    %15 = vector.multi_reduction <add>, %14, %cst_6 [2] : vector<1x8x8xf32> to vector<1x8xf32>
    %16 = vector.shape_cast %15 : vector<1x8xf32> to vector<1x8x1xf32>
    %17 = tpu.reciprocal %16 {approx = true} : vector<1x8x1xf32> -> vector<1x8x1xf32>
    %18 = vector.broadcast %17 : vector<1x8x1xf32> to vector<1x8x8xf32>
    %19 = arith.mulf %14, %18 : vector<1x8x8xf32>
    %20 = arith.truncf %19 : vector<1x8x8xf32> to vector<1x8x8xbf16>
    "tpu.trace_start"() <{level = 10 : i32, message = "bqk,bkd->bqd"}> : () -> ()
    %cst_7 = arith.constant dense<0.000000e+00> : vector<1x8x128xf32>
    %21 = tpu.matmul %20, %8, %cst_7 {dimension_numbers = #tpu.dot_dimension_numbers<[2], [1], [1], [2], [0, 0, 0, 1, 1, 2], [0], [0]>} : vector<1x8x8xbf16>, vector<1x8x128xbf16>, vector<1x8x128xf32> -> vector<1x8x128xf32>
    "tpu.trace_stop"() : () -> ()
    %22 = vector.shape_cast %21 : vector<1x8x128xf32> to vector<8x128xf32>
    %23 = arith.truncf %22 : vector<8x128xf32> to vector<8x128xbf16>
    %c0_8 = arith.constant 0 : index
    %c0_9 = arith.constant 0 : index
    %24 = vector.load %arg5[%c0_8, %c0_9] : memref<8x512xbf16, #tpu.memory_space<vmem>>, vector<8x128xbf16>
    tpu.vector_store %arg5[%c0_8, %c0_9], %23 {strides = array<i32>} : memref<8x512xbf16, #tpu.memory_space<vmem>>, vector<8x128xbf16>,
    %25 = vector.extract_strided_slice %5 {offsets = [0, 0, 128], sizes = [1, 8, 128], strides = [1, 1, 1]} : vector<1x8x1536xbf16> to vector<1x8x128xbf16>
    %26 = vector.extract_strided_slice %5 {offsets = [0, 0, 640], sizes = [1, 8, 128], strides = [1, 1, 1]} : vector<1x8x1536xbf16> to vector<1x8x128xbf16>
    %27 = vector.extract_strided_slice %5 {offsets = [0, 0, 1152], sizes = [1, 8, 128], strides = [1, 1, 1]} : vector<1x8x1536xbf16> to vector<1x8x128xbf16>
    "tpu.trace_start"() <{level = 10 : i32, message = "bqd,bkd->bqk"}> : () -> ()
    %cst_10 = arith.constant dense<0.000000e+00> : vector<1x8x8xf32>
    %28 = tpu.matmul %25, %26, %cst_10 {dimension_numbers = #tpu.dot_dimension_numbers<[2], [2], [1], [1], [0, 0, 0, 1, 1, 1], [0], [0]>} : vector<1x8x128xbf16>, vector<1x8x128xbf16>, vector<1x8x8xf32> -> vector<1x8x8xf32>
    "tpu.trace_stop"() : () -> ()
    %cst_11 = arith.constant dense<0xFF800000> : vector<1x8xf32>
    %29 = vector.multi_reduction <maximumf>, %28, %cst_11 [2] : vector<1x8x8xf32> to vector<1x8xf32>
    %30 = vector.shape_cast %29 : vector<1x8xf32> to vector<1x8x1xf32>
    %31 = vector.broadcast %30 : vector<1x8x1xf32> to vector<1x8x8xf32>
    %32 = arith.subf %28, %31 : vector<1x8x8xf32>
    %33 = math.exp %32 : vector<1x8x8xf32>
    %cst_12 = arith.constant dense<0.000000e+00> : vector<1x8xf32>
    %34 = vector.multi_reduction <add>, %33, %cst_12 [2] : vector<1x8x8xf32> to vector<1x8xf32>
    %35 = vector.shape_cast %34 : vector<1x8xf32> to vector<1x8x1xf32>
    %36 = tpu.reciprocal %35 {approx = true} : vector<1x8x1xf32> -> vector<1x8x1xf32>
    %37 = vector.broadcast %36 : vector<1x8x1xf32> to vector<1x8x8xf32>
    %38 = arith.mulf %33, %37 : vector<1x8x8xf32>
    %39 = arith.truncf %38 : vector<1x8x8xf32> to vector<1x8x8xbf16>
    "tpu.trace_start"() <{level = 10 : i32, message = "bqk,bkd->bqd"}> : () -> ()
    %cst_13 = arith.constant dense<0.000000e+00> : vector<1x8x128xf32>
    %40 = tpu.matmul %39, %27, %cst_13 {dimension_numbers = #tpu.dot_dimension_numbers<[2], [1], [1], [2], [0, 0, 0, 1, 1, 2], [0], [0]>} : vector<1x8x8xbf16>, vector<1x8x128xbf16>, vector<1x8x128xf32> -> vector<1x8x128xf32>
    "tpu.trace_stop"() : () -> ()
    %41 = vector.shape_cast %40 : vector<1x8x128xf32> to vector<8x128xf32>
    %42 = arith.truncf %41 : vector<8x128xf32> to vector<8x128xbf16>
    %c0_14 = arith.constant 0 : index
    %c128 = arith.constant 128 : index
    %43 = vector.load %arg5[%c0_14, %c128] : memref<8x512xbf16, #tpu.memory_space<vmem>>, vector<8x128xbf16>
    tpu.vector_store %arg5[%c0_14, %c128], %42 {strides = array<i32>} : memref<8x512xbf16, #tpu.memory_space<vmem>>, vector<8x128xbf16>,
    %44 = vector.extract_strided_slice %5 {offsets = [0, 0, 256], sizes = [1, 8, 128], strides = [1, 1, 1]} : vector<1x8x1536xbf16> to vector<1x8x128xbf16>
    %45 = vector.extract_strided_slice %5 {offsets = [0, 0, 768], sizes = [1, 8, 128], strides = [1, 1, 1]} : vector<1x8x1536xbf16> to vector<1x8x128xbf16>
    %46 = vector.extract_strided_slice %5 {offsets = [0, 0, 1280], sizes = [1, 8, 128], strides = [1, 1, 1]} : vector<1x8x1536xbf16> to vector<1x8x128xbf16>
    "tpu.trace_start"() <{level = 10 : i32, message = "bqd,bkd->bqk"}> : () -> ()
    %cst_15 = arith.constant dense<0.000000e+00> : vector<1x8x8xf32>
    %47 = tpu.matmul %44, %45, %cst_15 {dimension_numbers = #tpu.dot_dimension_numbers<[2], [2], [1], [1], [0, 0, 0, 1, 1, 1], [0], [0]>} : vector<1x8x128xbf16>, vector<1x8x128xbf16>, vector<1x8x8xf32> -> vector<1x8x8xf32>
    "tpu.trace_stop"() : () -> ()
    %cst_16 = arith.constant dense<0xFF800000> : vector<1x8xf32>
    %48 = vector.multi_reduction <maximumf>, %47, %cst_16 [2] : vector<1x8x8xf32> to vector<1x8xf32>
    %49 = vector.shape_cast %48 : vector<1x8xf32> to vector<1x8x1xf32>
    %50 = vector.broadcast %49 : vector<1x8x1xf32> to vector<1x8x8xf32>
    %51 = arith.subf %47, %50 : vector<1x8x8xf32>
    %52 = math.exp %51 : vector<1x8x8xf32>
    %cst_17 = arith.constant dense<0.000000e+00> : vector<1x8xf32>
    %53 = vector.multi_reduction <add>, %52, %cst_17 [2] : vector<1x8x8xf32> to vector<1x8xf32>
    %54 = vector.shape_cast %53 : vector<1x8xf32> to vector<1x8x1xf32>
    %55 = tpu.reciprocal %54 {approx = true} : vector<1x8x1xf32> -> vector<1x8x1xf32>
    %56 = vector.broadcast %55 : vector<1x8x1xf32> to vector<1x8x8xf32>
    %57 = arith.mulf %52, %56 : vector<1x8x8xf32>
    %58 = arith.truncf %57 : vector<1x8x8xf32> to vector<1x8x8xbf16>
    "tpu.trace_start"() <{level = 10 : i32, message = "bqk,bkd->bqd"}> : () -> ()
    %cst_18 = arith.constant dense<0.000000e+00> : vector<1x8x128xf32>
    %59 = tpu.matmul %58, %46, %cst_18 {dimension_numbers = #tpu.dot_dimension_numbers<[2], [1], [1], [2], [0, 0, 0, 1, 1, 2], [0], [0]>} : vector<1x8x8xbf16>, vector<1x8x128xbf16>, vector<1x8x128xf32> -> vector<1x8x128xf32>
    "tpu.trace_stop"() : () -> ()
    %60 = vector.shape_cast %59 : vector<1x8x128xf32> to vector<8x128xf32>
    %61 = arith.truncf %60 : vector<8x128xf32> to vector<8x128xbf16>
    %c0_19 = arith.constant 0 : index
    %c256 = arith.constant 256 : index
    %62 = vector.load %arg5[%c0_19, %c256] : memref<8x512xbf16, #tpu.memory_space<vmem>>, vector<8x128xbf16>
    tpu.vector_store %arg5[%c0_19, %c256], %61 {strides = array<i32>} : memref<8x512xbf16, #tpu.memory_space<vmem>>, vector<8x128xbf16>,
    %63 = vector.extract_strided_slice %5 {offsets = [0, 0, 384], sizes = [1, 8, 128], strides = [1, 1, 1]} : vector<1x8x1536xbf16> to vector<1x8x128xbf16>
    %64 = vector.extract_strided_slice %5 {offsets = [0, 0, 896], sizes = [1, 8, 128], strides = [1, 1, 1]} : vector<1x8x1536xbf16> to vector<1x8x128xbf16>
    %65 = vector.extract_strided_slice %5 {offsets = [0, 0, 1408], sizes = [1, 8, 128], strides = [1, 1, 1]} : vector<1x8x1536xbf16> to vector<1x8x128xbf16>
    "tpu.trace_start"() <{level = 10 : i32, message = "bqd,bkd->bqk"}> : () -> ()
    %cst_20 = arith.constant dense<0.000000e+00> : vector<1x8x8xf32>
    %66 = tpu.matmul %63, %64, %cst_20 {dimension_numbers = #tpu.dot_dimension_numbers<[2], [2], [1], [1], [0, 0, 0, 1, 1, 1], [0], [0]>} : vector<1x8x128xbf16>, vector<1x8x128xbf16>, vector<1x8x8xf32> -> vector<1x8x8xf32>
    "tpu.trace_stop"() : () -> ()
    %cst_21 = arith.constant dense<0xFF800000> : vector<1x8xf32>
    %67 = vector.multi_reduction <maximumf>, %66, %cst_21 [2] : vector<1x8x8xf32> to vector<1x8xf32>
    %68 = vector.shape_cast %67 : vector<1x8xf32> to vector<1x8x1xf32>
    %69 = vector.broadcast %68 : vector<1x8x1xf32> to vector<1x8x8xf32>
    %70 = arith.subf %66, %69 : vector<1x8x8xf32>
    %71 = math.exp %70 : vector<1x8x8xf32>
    %cst_22 = arith.constant dense<0.000000e+00> : vector<1x8xf32>
    %72 = vector.multi_reduction <add>, %71, %cst_22 [2] : vector<1x8x8xf32> to vector<1x8xf32>
    %73 = vector.shape_cast %72 : vector<1x8xf32> to vector<1x8x1xf32>
    %74 = tpu.reciprocal %73 {approx = true} : vector<1x8x1xf32> -> vector<1x8x1xf32>
    %75 = vector.broadcast %74 : vector<1x8x1xf32> to vector<1x8x8xf32>
    %76 = arith.mulf %71, %75 : vector<1x8x8xf32>
    %77 = arith.truncf %76 : vector<1x8x8xf32> to vector<1x8x8xbf16>
    "tpu.trace_start"() <{level = 10 : i32, message = "bqk,bkd->bqd"}> : () -> ()
    %cst_23 = arith.constant dense<0.000000e+00> : vector<1x8x128xf32>
    %78 = tpu.matmul %77, %65, %cst_23 {dimension_numbers = #tpu.dot_dimension_numbers<[2], [1], [1], [2], [0, 0, 0, 1, 1, 2], [0], [0]>} : vector<1x8x8xbf16>, vector<1x8x128xbf16>, vector<1x8x128xf32> -> vector<1x8x128xf32>
    "tpu.trace_stop"() : () -> ()
    %79 = vector.shape_cast %78 : vector<1x8x128xf32> to vector<8x128xf32>
    %80 = arith.truncf %79 : vector<8x128xf32> to vector<8x128xbf16>
    %c0_24 = arith.constant 0 : index
    %c384 = arith.constant 384 : index
    %81 = vector.load %arg5[%c0_24, %c384] : memref<8x512xbf16, #tpu.memory_space<vmem>>, vector<8x128xbf16>
    tpu.vector_store %arg5[%c0_24, %c384], %80 {strides = array<i32>} : memref<8x512xbf16, #tpu.memory_space<vmem>>, vector<8x128xbf16>,
    %c0_25 = arith.constant 0 : index
    %c0_26 = arith.constant 0 : index
    %82 = vector.load %arg5[%c0_25, %c0_26] : memref<8x512xbf16, #tpu.memory_space<vmem>>, vector<8x512xbf16>
    %c0_27 = arith.constant 0 : index
    %c0_28 = arith.constant 0 : index
    %83 = vector.load %arg3[%c0_27, %c0_28] : memref<512x32xbf16, #tpu.memory_space<vmem>>, vector<512x32xbf16>
    %cst_29 = arith.constant dense<0.000000e+00> : vector<8x32xf32>
    %84 = tpu.matmul %82, %83, %cst_29 {dimension_numbers = #tpu.dot_dimension_numbers<[1], [0], [0], [1], [0, 0, 1, 1], [], []>} : vector<8x512xbf16>, vector<512x32xbf16>, vector<8x32xf32> -> vector<8x32xf32>
    %85 = vector.shape_cast %84 : vector<8x32xf32> to vector<1x8x32xf32>
    %c0_30 = arith.constant 0 : index
    %c0_31 = arith.constant 0 : index
    %c0_32 = arith.constant 0 : index
    %86 = vector.load %arg4[%c0_30, %c0_31, %c0_32] : memref<1x8x32xf32, #tpu.memory_space<vmem>>, vector<1x8x32xf32>
    tpu.vector_store %arg4[%c0_30, %c0_31, %c0_32], %85 {strides = array<i32>} : memref<1x8x32xf32, #tpu.memory_space<vmem>>, vector<1x8x32xf32>,
    return
  }
  func.func @transform_0(%arg0: i32) -> (i32, i32, i32) {
    %c0_i32 = arith.constant 0 : i32
    %c0_i32_0 = arith.constant 0 : i32
    %c0_i32_1 = arith.constant 0 : i32
    return %arg0, %c0_i32, %c0_i32_0 : i32, i32, i32
  }
  func.func @transform_1(%arg0: i32) -> (i32, i32) {
    %c0_i32 = arith.constant 0 : i32
    %c0_i32_0 = arith.constant 0 : i32
    %c0_i32_1 = arith.constant 0 : i32
    return %c0_i32, %c0_i32_0 : i32, i32
  }
  func.func @transform_2(%arg0: i32) -> (i32, i32) {
    %c0_i32 = arith.constant 0 : i32
    %c0_i32_0 = arith.constant 0 : i32
    %c0_i32_1 = arith.constant 0 : i32
    return %c0_i32, %c0_i32_0 : i32, i32
  }
  func.func @transform_3(%arg0: i32) -> (i32, i32, i32) {
    %c0_i32 = arith.constant 0 : i32
    %c0_i32_0 = arith.constant 0 : i32
    %c0_i32_1 = arith.constant 0 : i32
    return %arg0, %c0_i32, %c0_i32_0 : i32, i32, i32
  }
}

</mosaic_0001>

<bundles_post_ra>
// kernel: tpu_custom_call.1
= control target key start
LH: loop header
LB: loop body
LE: loop exit
PB: predicated region body
PF: predicated region fallthrough
CT: control target
= control target key end

     0   :  { %8 = vsyncpa [#allocation4], 0  ;;  %s1875_s0 = inlined_call_operand.vmem [shape: bf16[2,8,32], index: 0, kind: input, shape index: {}]   ;;  %s1876_s1 = inlined_call_operand.vmem [shape: bf16[32,1536], index: 1, kind: input, shape index: {}]   ;;  %s1877_s2 = inlined_call_operand.vmem [shape: bf16[512,32], index: 2, kind: input, shape index: {}]   ;;  %s1878_s3 = inlined_call_operand.hbm [shape: f32[2,8,32], index: 3, kind: output, shape index: {}]  }
   0x1   :  { %10 = vsyncpa [#allocation4 + $0x1], 0  ;;  %s1525_s12 = smov 0   ;;  %s1527_s13 = smov 0  }
   0x2   :  { %s1529_s14 = smov 0   ;;  %s1531_s15 = smov 0  }
   0x3 LB: > { %s1546_s16 = sadd.s32 4294967295, %s1503_s15   ;;  %s1080_s17 = sadd.s32 4294967294, %s1503_s15   ;;  %s1503_s15 = sphi %s1531_s15, %s1884_s15   ;;  %s1499_s14 = sphi %s1529_s14, %s1883_s14   ;;  %s1495_s13 = sphi %s1527_s13, %s1882_s13   ;;  %s1491_s12 = sphi %s1525_s12, %s1881_s12  }
   0x4   : > { %s1550_s18 = sadd.s32 1, %s1503_s15   ;;  %s91_s19 = sadd.s32 1, %s1499_s14 }
   0x5   : > { %s88_s20 = ssub.s32 %s1503_s15, %s1550_s18  ;;  %p101_p0 = scmp.ne.s32.totalorder %s1499_s14, %s1495_s13 }
   0x6   : > { %p89_p1 = scmp.eq.s32.totalorder %s88_s20, 0  ;;  %p102_p2 = scmp.eq.s32.totalorder %s1546_s16, 1 }
   0x7   : > { %p107_p3 = scmp.ne.s32.totalorder %s1495_s13, %s1491_s12  ;;  %p108_p4 = scmp.eq.s32.totalorder %s1080_s17, 1 }
   0x8   : > { %s1561_s21 = scalar_select %p89_p1, %s1499_s14, %s91_s19  }
   0x9   : > { %p1563_p5 = por %p102_p2, %p101_p0  ;;  %p1567_p6 = por %p108_p4, %p107_p3 }
   0xa   : > { %p1083_p7 = scmp.ge.s32.totalorder %s1503_s15, 1  ;;  %p139_p8 = scmp.lt.s32.totalorder %s1503_s15, 3 }
   0xc   : > { %p140_p9 = pnand %p1083_p7, %p139_p8 }
   0xd   : > { %p162_p10 = scmp.lt.s32.totalorder (!%p140_p9), %s1546_s16, 1  ;;  %s159_s27 = sand.u32 (!%p140_p9), 1, %s1495_s13  }
   0xe   : > { %143 = sbr.rel (%p140_p9) target bundleno = 877 (0x36d), region = 32  ;;  %s1327_s30 = sshll.u32 (!%p140_p9), %s1546_s16, 3 }
   0xf   : > { %s1016_s5 = scalar_lea.hbm (!%p140_p9), %s1878_s3, %s1327_s30  ;;  %s1006_s9 = scalar_lea.sflag (!%p140_p9), [#allocation4], %s159_s27 }
  0x10   : > { %s1020_s8 = sshll.u32 (!%p140_p9), %s1016_s5, 4  ;;  %s1461_s19 = scalar_lea.hbm (!%p140_p9), %s1878_s3, 16  ;;  %s1021_s8 = int_to_ptr.hbm [resolvable:$true] %s1020_s8 }
  0x11   : > { %s1455_s10 = sshra.s32 (!%p140_p9), %s1021_s8, 4  ;;  %s1456_s10 = int_to_ptr.hbm [resolvable:$true] %s1455_s10 }
  0x12   : > { %p1462_p0 = scmp.lt.s32.totalorder (!%p140_p9), %s1456_s10, %s1878_s3 }
  0x13   : > { %v1136_v0 = vld [vmem:[%s1876_s1 + $0x60] sm:$0xf]  ;;  %v1348_v1 = vld [vmem:[%s1876_s1 + $0x8c] sm:$0xf0]  ;;  %v1342_v2 = vld [vmem:[%s1876_s1 + $0x64] sm:$0xf] }
  0x14   : > { %v1137_v3 = vor.u32 %v1348_v1, %v1136_v0  ;;  %v1138_v4 = vld [vmem:[%s1876_s1 + $0x90] sm:$0xf0]  ;;  %v1144_v5 = vld [vmem:[%s1876_s1 + $0x68] sm:$0xf]  ;;  %v1349_v6 = vld [vmem:[%s1876_s1 + $0x94] sm:$0xf0] }
  0x15   : > { %v1141_v7 = vor.u32 %v1342_v2, %v1138_v4  ;;  %v1145_v8 = vor.u32 %v1349_v6, %v1144_v5  ;;  %v1343_v9 = vld [vmem:[%s1876_s1 + $0x6c] sm:$0xf]  ;;  %v1146_v10 = vld [vmem:[%s1876_s1 + $0x98] sm:$0xf0]  ;;  %v1088_v11 = vld [vmem:[%s1876_s1] sm:$0xf] }
  0x16   : > { %322 = vmatpush.bf16.msra.mxu0 %v1137_v3  ;;  %v1149_v12 = vor.u32 %v1343_v9, %v1146_v10  ;;  %v1336_v13 = vld [vmem:[%s1876_s1 + $0x2c] sm:$0xf0]  ;;  %v1330_v14 = vld [vmem:[%s1876_s1 + $0x4] sm:$0xf]  ;;  %v1090_v15 = vld [vmem:[%s1876_s1 + $0x30] sm:$0xf0] }
  0x17   : > { %335 = vmatpush.bf16.msra.mxu1 %v1141_v7  ;;  %348 = vmatpush.bf16.msra.mxu2 %v1145_v8  ;;  %v1089_v16 = vor.u32 %v1336_v13, %v1088_v11  ;;  %v1093_v17 = vor.u32 %v1330_v14, %v1090_v15  ;;  %v1096_v18 = vld [vmem:[%s1876_s1 + $0x8] sm:$0xf]  ;;  %v1337_v19 = vld [vmem:[%s1876_s1 + $0x34] sm:$0xf0]  ;;  %v1331_v20 = vld [vmem:[%s1876_s1 + $0xc] sm:$0xf] }
  0x18   : > { %361 = vmatpush.bf16.msra.mxu3 %v1149_v12  ;;  %v1097_v21 = vor.u32 %v1337_v19, %v1096_v18  ;;  %v1098_v22 = vld [vmem:[%s1876_s1 + $0x38] sm:$0xf0]  ;;  %v1152_v23 = vld [vmem:[%s1876_s1 + $0x70] sm:$0xf]  ;;  %v1350_v25 = vld [vmem:[%s1876_s1 + $0x9c] sm:$0xf0] }
  0x19   : > { %v1101_v24 = vor.u32 %v1331_v20, %v1098_v22  ;;  %v1344_v26 = vld [vmem:[%s1876_s1 + $0x74] sm:$0xf]  ;;  %v1154_v27 = vld [vmem:[%s1876_s1 + $0xa0] sm:$0xf0]  ;;  %s163_s28 = scalar_select %p162_p10, %s1546_s16, 1  ;;  %v1153_v28 = vor.u32 %v1350_v25, %v1152_v23  ;;  %vm312_vm0 = vcmask 261120  }
  0x1a   : > { %323 = vmatpush.bf16.msra.mxu0 %v1089_v16  ;;  %v1157_v29 = vor.u32 %v1344_v26, %v1154_v27  ;;  %v1160_v30 = vld [vmem:[%s1876_s1 + $0x78] sm:$0xf]  ;;  %v1351_v31 = vld [vmem:[%s1876_s1 + $0xa4] sm:$0xf0]  ;;  %v1345_v33 = vld [vmem:[%s1876_s1 + $0x7c] sm:$0xf] }
  0x1b   : > { %336 = vmatpush.bf16.msra.mxu1 %v1093_v17  ;;  %349 = vmatpush.bf16.msra.mxu2 %v1097_v21  ;;  %v1161_v32 = vor.u32 %v1351_v31, %v1160_v30  ;;  %v1162_v34 = vld [vmem:[%s1876_s1 + $0xa8] sm:$0xf0]  ;;  %v1104_v35 = vld [vmem:[%s1876_s1 + $0x10] sm:$0xf]  ;;  %s1085_s17 = sshll.u32 %s163_s28, 2  ;;  %vm507_vm1 = vcmask 1043456  }
  0x1c   : > { %362 = vmatpush.bf16.msra.mxu3 %v1101_v24  ;;  %v1165_v36 = vor.u32 %v1345_v33, %v1162_v34  ;;  %v1338_v37 = vld [vmem:[%s1876_s1 + $0x3c] sm:$0xf0]  ;;  %v1332_v38 = vld [vmem:[%s1876_s1 + $0x14] sm:$0xf]  ;;  %s165_s29 = scalar_lea.vmem %s1875_s0, %s1085_s17  ;;  %v1106_v40 = vld [vmem:[%s1876_s1 + $0x40] sm:$0xf0] }
  0x1d   : > { %v1105_v39 = vor.u32 %v1338_v37, %v1104_v35  ;;  %v1112_v41 = vld [vmem:[%s1876_s1 + $0x18] sm:$0xf]  ;;  %v1339_v42 = vld [vmem:[%s1876_s1 + $0x44] sm:$0xf0]  ;;  %v167_v43 = vld [vmem:[%s165_s29] sm:$0xf]  ;;  %v1109_v44 = vor.u32 %v1332_v38, %v1106_v40 }
  0x1e   : > { %374 = vmatpush.bf16.msrb.mxu0 %v1153_v28  ;;  %v1113_v45 = vor.u32 %v1339_v42, %v1112_v41  ;;  %v1333_v46 = vld [vmem:[%s1876_s1 + $0x1c] sm:$0xf]  ;;  %v1114_v47 = vld [vmem:[%s1876_s1 + $0x48] sm:$0xf0]  ;;  %1183 = vmatmul.msk.bf16.vlgmr.msra.gmra.mxu1 %vm312_vm0, %v167_v43  ;;  %v1176_v49 = vld [vmem:[%s1876_s1 + $0x88] sm:$0xf] }
  0x1f   : > { %387 = vmatpush.bf16.msrb.mxu1 %v1157_v29  ;;  %400 = vmatpush.bf16.msrb.mxu2 %v1161_v32  ;;  %v1117_v48 = vor.u32 %v1333_v46, %v1114_v47  ;;  %v1353_v50 = vld [vmem:[%s1876_s1 + $0xb4] sm:$0xf0]  ;;  %v1128_v52 = vld [vmem:[%s1876_s1 + $0x28] sm:$0xf]  ;;  %v1168_v55 = vld [vmem:[%s1876_s1 + $0x80] sm:$0xf] }
  0x20   : > { %413 = vmatpush.bf16.msrb.mxu3 %v1165_v36  ;;  %1182 = vmatmul.msk.bf16.vlgmr.msra.gmra.mxu0 %vm312_vm0, %v167_v43  ;;  %v1177_v51 = vor.u32 %v1353_v50, %v1176_v49  ;;  %v1341_v53 = vld [vmem:[%s1876_s1 + $0x54] sm:$0xf0]  ;;  %v1352_v56 = vld [vmem:[%s1876_s1 + $0xac] sm:$0xf0]  ;;  %v1347_v58 = vld [vmem:[%s1876_s1 + $0x8c] sm:$0xf] }
  0x21   : > { %1184 = vmatmul.msk.bf16.vlgmr.msra.gmra.mxu2 %vm312_vm0, %v167_v43  ;;  %1185 = vmatmul.msk.bf16.vlgmr.msra.gmra.mxu3 %vm312_vm0, %v167_v43  ;;  %v1129_v54 = vor.u32 %v1341_v53, %v1128_v52  ;;  %v1169_v57 = vor.u32 %v1352_v56, %v1168_v55  ;;  %v1178_v59 = vld [vmem:[%s1876_s1 + $0xb8] sm:$0xf0]  ;;  %v1120_v60 = vld [vmem:[%s1876_s1 + $0x20] sm:$0xf]  ;;  %v1340_v61 = vld [vmem:[%s1876_s1 + $0x4c] sm:$0xf0] }
  0x22   : > { %375 = vmatpush.bf16.msrb.mxu0 %v1105_v39  ;;  %v1181_v62 = vor.u32 %v1347_v58, %v1178_v59  ;;  %v1121_v63 = vor.u32 %v1340_v61, %v1120_v60  ;;  %v1335_v0 = vld [vmem:[%s1876_s1 + $0x2c] sm:$0xf]  ;;  %v1130_v1 = vld [vmem:[%s1876_s1 + $0x58] sm:$0xf0]  ;;  %v1346_v3 = vld [vmem:[%s1876_s1 + $0x84] sm:$0xf] }
  0x23   : > { %388 = vmatpush.bf16.msrb.mxu1 %v1109_v44  ;;  %401 = vmatpush.bf16.msrb.mxu2 %v1113_v45  ;;  %v1133_v2 = vor.u32 %v1335_v0, %v1130_v1  ;;  %v1170_v4 = vld [vmem:[%s1876_s1 + $0xb0] sm:$0xf0]  ;;  %v1334_v6 = vld [vmem:[%s1876_s1 + $0x24] sm:$0xf]  ;;  %vm491_vm2 = vcmask 64512   ;;  %s1084_s29 = sshll.u32 %s159_s27, 3 }
  0x24   : > { %414 = vmatpush.bf16.msrb.mxu3 %v1117_v48  ;;  %v1173_v5 = vor.u32 %v1346_v3, %v1170_v4  ;;  %v1122_v7 = vld [vmem:[%s1876_s1 + $0x50] sm:$0xf0]  ;;  %s161_s6 = scalar_lea.vmem [#allocation3], %s1084_s29  ;;  %s1457_s16 = scalar_lea.hbm %s1456_s10, 8 }
  0x25   : > { %v1125_v8 = vor.u32 %v1334_v6, %v1122_v7  ;;  %s1018_s7 = sshll.u32 %s161_s6, 4  ;;  %p1458_p11 = scmp.ne.s32.totalorder %s1456_s10, %s1457_s16  ;;  %s1019_s7 = int_to_ptr.vmem [resolvable:$true] %s1018_s7 }
  0x26   : > { %426 = vmatpush.bf16.msra.mxu0 %v1169_v57  ;;  %p1463_p1 = scmp.lt.s32.totalorder %s1461_s19, %s1457_s16 }
  0x27   : > { %452 = vmatpush.bf16.msra.mxu2 %v1177_v51  ;;  %439 = vmatpush.bf16.msra.mxu1 %v1173_v5  ;;  %p1459_p12 = pnand %p1458_p11, %p1563_p5 }
  0x28   : > { %465 = vmatpush.bf16.msra.mxu3 %v1181_v62  ;;  %p1464_p2 = por %p1463_p1, %p1462_p0 }
  0x29   : > { %p1460_p13 = pneg %p1459_p12 }
  0x2a   : > { %427 = vmatpush.bf16.msra.mxu0 %v1121_v63 }
  0x2b   : > { %453 = vmatpush.bf16.msra.mxu2 %v1129_v54  ;;  %440 = vmatpush.bf16.msra.mxu1 %v1125_v8  ;;  %p1465_p3 = pnand %p1464_p2, %p1460_p13 }
  0x2c   : > { %466 = vmatpush.bf16.msra.mxu3 %v1133_v2 }
  0x2e   : > { %1187 = vmatmul.msk.bf16.vlgmr.msrb.gmra.mxu1 %vm312_vm0, %v167_v43 }
  0x30   : > { %1186 = vmatmul.msk.bf16.vlgmr.msrb.gmra.mxu0 %vm312_vm0, %v167_v43 }
  0x31   : > { %1188 = vmatmul.msk.bf16.vlgmr.msrb.gmra.mxu2 %vm312_vm0, %v167_v43  ;;  %1189 = vmatmul.msk.bf16.vlgmr.msrb.gmra.mxu3 %vm312_vm0, %v167_v43 }
  0x3e   : > { %1191 = vmatmul.msk.bf16.vlgmr.msra.gmra.mxu1 %vm312_vm0, %v167_v43 }
  0x40   : > { %1190 = vmatmul.msk.bf16.vlgmr.msra.gmra.mxu0 %vm312_vm0, %v167_v43 }
  0x41   : > { %1192 = vmatmul.msk.bf16.vlgmr.msra.gmra.mxu2 %vm312_vm0, %v167_v43  ;;  %1193 = vmatmul.msk.bf16.vlgmr.msra.gmra.mxu3 %vm312_vm0, %v167_v43 }
  0x9b   : > { %v338_v10 = vpop.f32.mrf.mxu1 }
  0x9d   : > { %v325_v9 = vpop.f32.mrf.mxu0 }
  0x9e   : > { %v472_v21 = vpack.c.bf16 %v338_v10, %v325_v9 }
  0xa0   : > { %v527_v27 = vrot.slane %v472_v21, 4 }
  0xa3   : > { %v340_v14 = vpop.f32.mrf.mxu1 }
  0xa4   : > { %v351_v11 = vpop.f32.mrf.mxu2  ;;  %v364_v12 = vpop.f32.mrf.mxu3 }
  0xa5   : > { %v327_v13 = vpop.f32.mrf.mxu0  ;;  %v473_v31 = vpack.c.bf16 %v364_v12, %v351_v11 }
  0xa7   : > { %v627_v32 = vrot.slane %v473_v31, 4 }
  0xab   : > { %v390_v18 = vpop.f32.mrf.mxu1 }
  0xac   : > { %v353_v15 = vpop.f32.mrf.mxu2  ;;  %v366_v16 = vpop.f32.mrf.mxu3 }
  0xad   : > { %v377_v17 = vpop.f32.mrf.mxu0 }
  0xae   : > { %v474_v19 = vpack.c.bf16 %v390_v18, %v377_v17  ;;  %v1361_v18 = vld [vmem:[%s1877_s2 + $0x38] sm:$0xff] }
  0xb0   : > { %v530_v20 = vrot.slane %v474_v19, 4  ;;  %485 = vmatpush.bf16.xpose.msrb.mxu0 %v474_v19  ;;  %v1360_v19 = vld [vmem:[%s1877_s2 + $0x30] sm:$0xff] }
  0xb2   : > { %539 = vmatpush.bf16.xpose.msrb.mxu2 %v530_v20 }
  0xb3   : > { %v392_v25 = vpop.f32.mrf.mxu1 }
  0xb4   : > { %v403_v22 = vpop.f32.mrf.mxu2  ;;  %v416_v23 = vpop.f32.mrf.mxu3  ;;  %v1358_v25 = vld [vmem:[%s1877_s2 + $0x20] sm:$0xff] }
  0xb5   : > { %v379_v24 = vpop.f32.mrf.mxu0  ;;  %v475_v26 = vpack.c.bf16 %v416_v23, %v403_v22 }
  0xb6   : > { %v1359_v24 = vld [vmem:[%s1877_s2 + $0x28] sm:$0xff] }
  0xb7   : > { %v630_v28 = vrot.slane %v475_v26, 4  ;;  %486 = vmatmul.bf16.vlgmr.msrb.gmra.mxu0 %v472_v21 }
  0xb8   : > { %587 = vmatpush.bf16.xpose.msra.mxu0 %v475_v26 }
  0xb9   : > { %540 = vmatmul.bf16.vlgmr.msrb.gmra.mxu2 %v527_v27 }
  0xba   : > { %639 = vmatpush.bf16.xpose.msra.mxu2 %v630_v28 }
  0xbb   : > { %v442_v35 = vpop.f32.mrf.mxu1 }
  0xbc   : > { %v405_v29 = vpop.f32.mrf.mxu2  ;;  %v418_v30 = vpop.f32.mrf.mxu3 }
  0xbd   : > { %v429_v33 = vpop.f32.mrf.mxu0  ;;  %v1369_v29 = vld [vmem:[%s1877_s2 + $0x78] sm:$0xff] }
  0xbe   : > { %v476_v37 = vpack.c.bf16 %v442_v35, %v429_v33  ;;  %v1367_v35 = vld [vmem:[%s1877_s2 + $0x68] sm:$0xff] }
  0xc0   : > { %v509_v40 = vsel %vm507_vm1, %v476_v37, 0  ;;  %v558_v41 = vrot.slane %v476_v37, 4  ;;  %952 = vmatpush.bf16.msrb.mxu0 %v1361_v18  ;;  %v1366_v37 = vld [vmem:[%s1877_s2 + $0x60] sm:$0xff] }
  0xc1   : > { %518 = vmatpush.bf16.msrb.mxu1 %v509_v40 }
  0xc2   : > { %v563_v45 = vsel %vm507_vm1, %v558_v41, 0  ;;  %v1357_v41 = vld [vmem:[%s1877_s2 + $0x18] sm:$0xff] }
  0xc3   : > { %572 = vmatpush.bf16.msrb.mxu3 %v563_v45  ;;  %v444_v47 = vpop.f32.mrf.mxu1  ;;  %v1356_v45 = vld [vmem:[%s1877_s2 + $0x10] sm:$0xff] }
  0xc4   : > { %v455_v34 = vpop.f32.mrf.mxu2  ;;  %v468_v39 = vpop.f32.mrf.mxu3  ;;  %953 = vmatpush.bf16.msrb.mxu0 %v1360_v19  ;;  %v1376_v47 = vld [vmem:[%s1877_s2 + $0xb0] sm:$0xff] }
  0xc5   : > { %v431_v36 = vpop.f32.mrf.mxu0  ;;  %v477_v42 = vpack.c.bf16 %v468_v39, %v455_v34 }
  0xc7   : > { %588 = vmatmul.bf16.vlgmr.msra.gmra.mxu0 %v473_v31  ;;  %v609_v43 = vsel %vm507_vm1, %v477_v42, 0  ;;  %v658_v44 = vrot.slane %v477_v42, 4  ;;  %v1368_v31 = vld [vmem:[%s1877_s2 + $0x70] sm:$0xff]  ;;  %v1365_v42 = vld [vmem:[%s1877_s2 + $0x58] sm:$0xff] }
  0xc8   : > { %618 = vmatpush.bf16.msra.mxu1 %v609_v43  ;;  %954 = vmatpush.bf16.msrb.mxu0 %v1359_v24  ;;  %v1377_v43 = vld [vmem:[%s1877_s2 + $0xb8] sm:$0xff] }
  0xc9   : > { %640 = vmatmul.bf16.vlgmr.msra.gmra.mxu2 %v627_v32  ;;  %v663_v46 = vsel %vm507_vm1, %v658_v44, 0  ;;  %v1385_v44 = vld [vmem:[%s1877_s2 + $0xf8] sm:$0xff] }
  0xca   : > { %672 = vmatpush.bf16.msra.mxu3 %v663_v46  ;;  %978 = vmatpush.bf16.msrb.mxu2 %v1377_v43  ;;  %v1364_v46 = vld [vmem:[%s1877_s2 + $0x50] sm:$0xff] }
  0xcc   : > { %v457_v38 = vpop.f32.mrf.mxu2  ;;  %v470_v48 = vpop.f32.mrf.mxu3  ;;  %955 = vmatpush.bf16.msrb.mxu0 %v1358_v25 }
  0xcd   : > { %v1384_v48 = vld [vmem:[%s1877_s2 + $0xf0] sm:$0xff] }
  0xce   : > { %979 = vmatpush.bf16.msrb.mxu2 %v1376_v47 }
  0xd0   : > { %956 = vmatpush.bf16.msrb.mxu0 %v1357_v41 }
  0xd4   : > { %957 = vmatpush.bf16.msrb.mxu0 %v1356_v45 }
 0x134   : > { %v487_v49 = vpop.f32.mrf.mxu0 }
 0x135   : > { %v492_v55 = vsel %vm491_vm2, %v487_v49, -inf }
 0x13c   : > { %v489_v50 = vpop.f32.mrf.mxu0  ;;  %v541_v51 = vpop.f32.mrf.mxu2 }
 0x13d   : > { %v545_v52 = vsel %vm491_vm2, %v541_v51, -inf  ;;  %v1363_v50 = vld [vmem:[%s1877_s2 + $0x48] sm:$0xff] }
 0x13e   : > { %546 = vmax.xlane.f32.xlu0 %v545_v52  ;;  %v1383_v52 = vld [vmem:[%s1877_s2 + $0xe8] sm:$0xff] }
 0x144   : > { %v543_v53 = vpop.f32.mrf.mxu2  ;;  %v589_v54 = vpop.f32.mrf.mxu0 }
 0x145   : > { %v593_v60 = vsel %vm491_vm2, %v589_v54, -inf  ;;  %v1354_v53 = vld [vmem:[%s1877_s2] sm:$0xff] }
 0x146   : > { %493 = vmax.xlane.f32.xlu0 %v492_v55  ;;  %v1374_v55 = vld [vmem:[%s1877_s2 + $0xa0] sm:$0xff] }
 0x14c   : > { %v591_v56 = vpop.f32.mrf.mxu0  ;;  %v641_v57 = vpop.f32.mrf.mxu2 }
 0x14d   : > { %v645_v58 = vsel %vm491_vm2, %v641_v57, -inf  ;;  %v1382_v56 = vld [vmem:[%s1877_s2 + $0xe0] sm:$0xff] }
 0x14e   : > { %646 = vmax.xlane.f32.xlu1 %v645_v58  ;;  %v1381_v58 = vld [vmem:[%s1877_s2 + $0xd8] sm:$0xff] }
 0x154   : > { %v643_v59 = vpop.f32.mrf.mxu2 }
 0x155   : > { %v1372_v59 = vld [vmem:[%s1877_s2 + $0x90] sm:$0xff] }
 0x156   : > { %594 = vmax.xlane.f32.xlu1 %v593_v60  ;;  %v1380_v60 = vld [vmem:[%s1877_s2 + $0xd0] sm:$0xff] }
 0x1b1   : > { %v547_v61 = vpop.xlane.xlu0 %546 }
 0x1b2   : > { %v548_v62 = vsub.f32 %v541_v51, %v547_v61  ;;  %v1375_v51 = vld [vmem:[%s1877_s2 + $0xa8] sm:$0xff] }
 0x1b3   : > { %980 = vmatpush.bf16.msrb.mxu2 %v1375_v51  ;;  %v1371_v61 = vld [vmem:[%s1877_s2 + $0x88] sm:$0xff] }
 0x1b4   : > { %v549_v63 = vmul.f32 1.442695, %v548_v62  ;;  %v1379_v62 = vld [vmem:[%s1877_s2 + $0xc8] sm:$0xff] }
 0x1b6   : > { %1425 = vpow2.f32 %v549_v63  ;;  %v1370_v63 = vld [vmem:[%s1877_s2 + $0x80] sm:$0xff] }
 0x1b7   : > { %981 = vmatpush.bf16.msrb.mxu2 %v1374_v55 }
 0x1b9   : > { %v494_v0 = vpop.xlane.xlu0 %493 }
 0x1ba   : > { %v495_v1 = vsub.f32 %v487_v49, %v494_v0  ;;  %v1355_v49 = vld [vmem:[%s1877_s2 + $0x8] sm:$0xff]  ;;  %v1378_v0 = vld [vmem:[%s1877_s2 + $0xc0] sm:$0xff] }
 0x1bb   : > { %958 = vmatpush.bf16.msrb.mxu0 %v1355_v49 }
 0x1bc   : > { %v1426_v2 = vpop.eup %1425  ;;  %v496_v3 = vmul.f32 1.442695, %v495_v1 }
 0x1bd   : > { %v551_v4 = vsel %vm491_vm2, %v1426_v2, 0.0 }
 0x1be   : > { %1427 = vpow2.f32 %v496_v3  ;;  %552 = vadd.xlane.f32.xlu2 %v551_v4 }
 0x1bf   : > { %959 = vmatpush.bf16.msrb.mxu0 %v1354_v53 }
 0x1c1   : > { %v647_v5 = vpop.xlane.xlu1 %646 }
 0x1c2   : > { %v648_v6 = vsub.f32 %v641_v57, %v647_v5  ;;  %v1373_v57 = vld [vmem:[%s1877_s2 + $0x98] sm:$0xff] }
 0x1c3   : > { %982 = vmatpush.bf16.msrb.mxu2 %v1373_v57 }
 0x1c4   : > { %v1428_v7 = vpop.eup %1427  ;;  %v649_v8 = vmul.f32 1.442695, %v648_v6 }
 0x1c5   : > { %v498_v9 = vsel %vm491_vm2, %v1428_v7, 0.0 }
 0x1c6   : > { %1429 = vpow2.f32 %v649_v8  ;;  %499 = vadd.xlane.f32.xlu2 %v498_v9 }
 0x1c7   : > { %983 = vmatpush.bf16.msrb.mxu2 %v1372_v59 }
 0x1c9   : > { %v595_v10 = vpop.xlane.xlu1 %594 }
 0x1ca   : > { %v596_v11 = vsub.f32 %v589_v54, %v595_v10  ;;  %v1362_v54 = vld [vmem:[%s1877_s2 + $0x40] sm:$0xff] }
 0x1cb   : > { %984 = vmatpush.bf16.msrb.mxu2 %v1371_v61 }
 0x1cc   : > { %v1430_v12 = vpop.eup %1429  ;;  %v597_v13 = vmul.f32 1.442695, %v596_v11 }
 0x1cd   : > { %v651_v14 = vsel %vm491_vm2, %v1430_v12, 0.0 }
 0x1ce   : > { %1431 = vpow2.f32 %v597_v13  ;;  %652 = vadd.xlane.f32.xlu0 %v651_v14 }
 0x1cf   : > { %985 = vmatpush.bf16.msrb.mxu2 %v1370_v63 }
 0x1d4   : > { %v1432_v15 = vpop.eup %1431 }
 0x1d5   : > { %v599_v16 = vsel %vm491_vm2, %v1432_v15, 0.0 }
 0x1d6   : > { %600 = vadd.xlane.f32.xlu1 %v599_v16 }
 0x231   : > { %v553_v17 = vpop.xlane.xlu2 %552 }
 0x232   : > { %1433 = vrcp.f32 %v553_v17 }
 0x238   : > { %v1434_v20 = vpop.eup %1433 }
 0x239   : > { %v555_v21 = vmul.f32 %v1434_v20, %v1426_v2  ;;  %v500_v22 = vpop.xlane.xlu2 %499 }
 0x23a   : > { %1435 = vrcp.f32 %v500_v22 }
 0x23b   : > { %v556_v23 = vpack.c.bf16 %v555_v21, %v555_v21 }
 0x23d   : > { %1195 = vmatmul.msk.bf16.vlgmr.msrb.gmra.mxu3 %vm491_vm2, %v556_v23 }
 0x23e   : > { %991 = vmatpush.bf16.msrb.mxu3 %v1385_v44 }
 0x240   : > { %v1436_v26 = vpop.eup %1435 }
 0x241   : > { %v502_v27 = vmul.f32 %v1436_v26, %v1428_v7  ;;  %v653_v28 = vpop.xlane.xlu0 %652 }
 0x242   : > { %1437 = vrcp.f32 %v653_v28  ;;  %992 = vmatpush.bf16.msrb.mxu3 %v1384_v48 }
 0x243   : > { %v503_v30 = vpack.c.bf16 %v502_v27, %v502_v27 }
 0x245   : > { %1194 = vmatmul.msk.bf16.vlgmr.msrb.gmra.mxu1 %vm491_vm2, %v503_v30 }
 0x246   : > { %965 = vmatpush.bf16.msrb.mxu1 %v1369_v29  ;;  %993 = vmatpush.bf16.msrb.mxu3 %v1383_v52 }
 0x248   : > { %v1438_v32 = vpop.eup %1437 }
 0x249   : > { %v655_v33 = vmul.f32 %v1438_v32, %v1430_v12  ;;  %v601_v34 = vpop.xlane.xlu1 %600 }
 0x24a   : > { %1439 = vrcp.f32 %v601_v34  ;;  %966 = vmatpush.bf16.msrb.mxu1 %v1368_v31  ;;  %994 = vmatpush.bf16.msrb.mxu3 %v1382_v56 }
 0x24b   : > { %v656_v36 = vpack.c.bf16 %v655_v33, %v655_v33 }
 0x24d   : > { %1197 = vmatmul.msk.bf16.vlgmr.msra.gmra.mxu3 %vm491_vm2, %v656_v36 }
 0x24e   : > { %967 = vmatpush.bf16.msrb.mxu1 %v1367_v35  ;;  %995 = vmatpush.bf16.msrb.mxu3 %v1381_v58 }
 0x250   : > { %v1440_v38 = vpop.eup %1439 }
 0x251   : > { %v603_v39 = vmul.f32 %v1440_v38, %v1432_v15 }
 0x252   : > { %968 = vmatpush.bf16.msrb.mxu1 %v1366_v37  ;;  %996 = vmatpush.bf16.msrb.mxu3 %v1380_v60 }
 0x253   : > { %v604_v40 = vpack.c.bf16 %v603_v39, %v603_v39 }
 0x255   : > { %1196 = vmatmul.msk.bf16.vlgmr.msra.gmra.mxu1 %vm491_vm2, %v604_v40 }
 0x256   : > { %969 = vmatpush.bf16.msrb.mxu1 %v1365_v42  ;;  %997 = vmatpush.bf16.msrb.mxu3 %v1379_v62 }
 0x25a   : > { %970 = vmatpush.bf16.msrb.mxu1 %v1364_v46  ;;  %998 = vmatpush.bf16.msrb.mxu3 %v1378_v0 }
 0x25e   : > { %971 = vmatpush.bf16.msrb.mxu1 %v1363_v50 }
 0x262   : > { %972 = vmatpush.bf16.msrb.mxu1 %v1362_v54 }
 0x2c0   : > { %v574_v1 = vpop.f32.mrf.mxu3 }
 0x2c1   : > { %v578_v2 = vpack.c.bf16 %v574_v1, %v574_v1 }
 0x2c2   : > { %v520_v3 = vpop.f32.mrf.mxu1 }
 0x2c3   : > { %579 = vst [vmem:[#allocation2 + $0x4] sm:$0xf] %v578_v2  ;;  %v524_v4 = vpack.c.bf16 %v520_v3, %v520_v3 }
 0x2c5   : > { %525 = vst [vmem:[#allocation2] sm:$0xf] %v524_v4 }
 0x2c8   : > { %v576_v5 = vpop.f32.mrf.mxu3 }
 0x2ca   : > { %v522_v6 = vpop.f32.mrf.mxu1 }
 0x2cc   : > { %v680_v7 = vld [vmem:[#allocation2] sm:$0xff] }
 0x2cd   : > { %v748_v8 = vunpack.c.l.b16 %v680_v7  ;;  %v749_v9 = vunpack.c.h.b16 %v680_v7 }
 0x2cf   : > { %v752_v10 = vpack.c.b16 %v748_v8, %v748_v8  ;;  %v753_v11 = vpack.c.b16 %v749_v9, %v749_v9 }
 0x2d0   : > { %v674_v12 = vpop.f32.mrf.mxu3 }
 0x2d1   : > { %v678_v13 = vpack.c.bf16 %v674_v12, %v674_v12  ;;  %960 = vmatmul.bf16.vlgmr.msrb.gmra.mxu0 %v752_v10  ;;  %973 = vmatmul.bf16.vlgmr.msrb.gmra.mxu1 %v753_v11 }
 0x2d2   : > { %v620_v14 = vpop.f32.mrf.mxu1 }
 0x2d3   : > { %679 = vst [vmem:[#allocation2 + $0xc] sm:$0xf] %v678_v13  ;;  %v624_v15 = vpack.c.bf16 %v620_v14, %v620_v14 }
 0x2d5   : > { %625 = vst [vmem:[#allocation2 + $0x8] sm:$0xf] %v624_v15 }
 0x2d8   : > { %v676_v16 = vpop.f32.mrf.mxu3 }
 0x2da   : > { %v622_v17 = vpop.f32.mrf.mxu1 }
 0x2dc   : > { %v681_v18 = vld [vmem:[#allocation2 + $0x8] sm:$0xff] }
 0x2dd   : > { %v750_v19 = vunpack.c.l.b16 %v681_v18  ;;  %v751_v20 = vunpack.c.h.b16 %v681_v18 }
 0x2df   : > { %v754_v21 = vpack.c.b16 %v750_v19, %v750_v19  ;;  %v755_v22 = vpack.c.b16 %v751_v20, %v751_v20 }
 0x2e1   : > { %986 = vmatmul.bf16.vlgmr.msrb.gmra.mxu2 %v754_v21  ;;  %999 = vmatmul.bf16.vlgmr.msrb.gmra.mxu3 %v755_v22 }
 0x34e   : > { %v961_v23 = vpop.f32.mrf.mxu0  ;;  %v974_v24 = vpop.f32.mrf.mxu1 }
 0x34f   : > { %v975_v27 = vadd.f32 %v974_v24, %v961_v23 }
 0x356   : > { %v963_v25 = vpop.f32.mrf.mxu0  ;;  %v976_v26 = vpop.f32.mrf.mxu1 }
 0x364   : > { %v987_v28 = vpop.f32.mrf.mxu2  ;;  %v1000_v29 = vpop.f32.mrf.mxu3 }
 0x365   : > { %v988_v30 = vadd.f32 %v987_v28, %v975_v27 }
 0x367   : > { %v1001_v31 = vadd.f32 %v1000_v29, %v988_v30 }
 0x369   : > { %1004 = vst.msk [vmem:[%s161_s6] sm:$0xff] %vm312_vm0, %v1001_v31 }
 0x36a   : > { %1468 = shalt.err (!%p1465_p3)
}
 0x36b   : > { %1386 = dma.vmem_to_hbm [thread:$0]  (%p1563_p5), %s1019_s7, 128, %s1021_s8, %s1006_s9  }
 0x36c   : > { %v989_v32 = vpop.f32.mrf.mxu2  ;;  %v1002_v33 = vpop.f32.mrf.mxu3 }
 0x36d PF: > { %p1392_p4 = scmp.ge.s32.totalorder %s1503_s15, 2  ;;  %s1032_s25 = sand.u32 1, %s1491_s12  }
 0x36e   : > { %s1033_s26 = scalar_lea.sflag [#allocation4], %s1032_s25 }
 0x36f   : > { %p1389_p7 = pnand %p1392_p4, %p1567_p6 }
 0x371   : > { %p1390_p8 = pneg %p1389_p7 }
 0x373   : > { %1486 = dma.done.wait (%p1390_p8), %s1033_s26, 128  }
 0x374   : > { %1488 = vsyncadd (%p1390_p8), %s1033_s26, 4294967168  ;;  %p13_p5 = scmp.ge.s32.totalorder %s1550_s18, 4   ;;  %s1881_s12 = smov %s1495_s13 }
 0x375   : > { %s1882_s13 = smov %s1499_s14  ;;  %s1883_s14 = smov %s1561_s21 }
 0x376   : > { %s1884_s15 = smov %s1550_s18  ;;  %15 = sbr.rel (!%p13_p5) target bundleno = 3 (0x3), region = 67 }
 0x37b   :  { %1039 = vsyncpa [#allocation4], 1 }
 0x37c   :  { %1041 = vsyncpa [#allocation4 + $0x1], 1 }

</bundles_post_ra>
